<compile_context>
chip_gen: v7x
topology: tpu7x:2x2x1
jax: 0.10.0
libtpu: 0.0.40
codegen_flags: <defaults>
</compile_context>

<pallas_src>
import functools

import jax
import jax.numpy as jnp
import numpy as np
from jax import lax
from jax.experimental import pallas as pl
from jax.experimental.pallas import tpu as pltpu


def _e2e_tuner_loss_kernel(targ_ref, preds_ref, lv_ref, out_ref, acc_ref,
                           *, num_valid, tile_b, mask_tail):
    """One batch tile per grid step; per-head CE partials accumulated in acc_ref.

    targ_ref : (TB, 1) int32     target class per example (this tile)
    preds_ref: (H, TB, C) float  logits for every head (this tile)
    lv_ref   : (H, 1) float32    log_vars (resident, constant index_map)
    out_ref  : (1, 1) float32    scalar total loss (SMEM)
    acc_ref  : (H, 1) float32    running sum of per-row (lse - picked) per head
    """
    b = pl.program_id(0)

    @pl.when(b == 0)
    def _init():
        acc_ref[...] = jnp.zeros_like(acc_ref)

    logits = preds_ref[...]                                  # (H, TB, C) input dtype
    H, TB, C = logits.shape

    # Numerically stable CE, vectorized over heads. The row max cancels out of
    # (lse - picked), so only the shifted slab needs the f32 upcast (feeds exp).
    m = jnp.max(logits, axis=-1, keepdims=True)              # (H, TB, 1)
    x = (logits - m).astype(jnp.float32)                     # (H, TB, C) f32
    lse = jnp.log(jnp.sum(jnp.exp(x), axis=-1))              # (H, TB)

    col = lax.broadcasted_iota(jnp.int32, x.shape, 2)        # (H, TB, C) class ids
    targ = targ_ref[...]                                     # (TB, 1)
    picked = jnp.sum(jnp.where(col == targ[None, :, :], x, 0.0), axis=-1)  # (H, TB)

    contrib = lse - picked                                   # (H, TB) per-row CE
    if mask_tail:
        row = b * tile_b + lax.broadcasted_iota(jnp.int32, (H, TB), 1)
        contrib = jnp.where(row < num_valid, contrib, 0.0)   # drop padded rows

    acc_ref[...] += jnp.sum(contrib, axis=1, keepdims=True)  # (H, 1)

    @pl.when(b == pl.num_programs(0) - 1)
    def _finalize():
        lv = lv_ref[...]                                     # (H, 1)
        ce = acc_ref[...] * jnp.float32(1.0 / num_valid)     # mean CE per head
        # Additive coefficients built in-kernel from static H:
        #   each of the H-1 mvo heads adds log_vars[1] (faithful to the PyTorch source),
        #   the tuner head adds log_vars[-1].  For H == 1 only the tuner term remains.
        head = lax.broadcasted_iota(jnp.int32, (H, 1), 0)
        coef = (jnp.where(head == 1, jnp.float32(H - 1), jnp.float32(0.0))
                + jnp.where(head == H - 1, jnp.float32(1.0), jnp.float32(0.0)))
        out_ref[0, 0] = jnp.sum(jnp.exp(-lv) * ce + coef * lv)


def _round_up(x, m):
    return ((x + m - 1) // m) * m


def e2e_tuner_loss(preds, targs, log_vars, *, tb_cap=512,
                   vmem_budget_bytes=16 * 1024 * 1024):
    """preds: [H, B, C] float logits; targs: [B] int labels; log_vars: [H] float32."""
    H, B, C = preds.shape

    # Batch tile: multiple of 8 (sublanes), doubled from 8 while a double-buffered
    # (H, TB, C) logits block stays within the VMEM budget.
    bytes_per_row = H * C * preds.dtype.itemsize
    max_tb = min(tb_cap, _round_up(B, 8))
    tb = 8
    while tb * 2 <= max_tb and 2 * (tb * 2) * bytes_per_row <= vmem_budget_bytes:
        tb *= 2

    b_pad = _round_up(B, tb)
    nb = b_pad // tb
    if b_pad != B:
        preds = jnp.pad(preds, ((0, 0), (0, b_pad - B), (0, 0)))
        targs = jnp.pad(targs, ((0, b_pad - B),))

    targs2d = targs.reshape(b_pad, 1).astype(jnp.int32)
    lv2d = log_vars.reshape(H, 1).astype(jnp.float32)

    kernel = functools.partial(
        _e2e_tuner_loss_kernel,
        num_valid=B, tile_b=tb, mask_tail=(b_pad != B),
    )

    out = pl.pallas_call(
        kernel,
        out_shape=jax.ShapeDtypeStruct((1, 1), jnp.float32),
        grid=(nb,),
        in_specs=[
            pl.BlockSpec((tb, 1), lambda b: (b, 0)),         # targets  (TB, 1)
            pl.BlockSpec((H, tb, C), lambda b: (0, b, 0)),   # logits   (H, TB, C)
            pl.BlockSpec((H, 1), lambda b: (0, 0)),          # log_vars (resident)
        ],
        out_specs=pl.BlockSpec(memory_space=pltpu.MemorySpace.SMEM),
        scratch_shapes=[pltpu.VMEM((H, 1), jnp.float32)],
        compiler_params=pltpu.CompilerParams(
            dimension_semantics=("arbitrary",),              # batch axis is a reduction
            vmem_limit_bytes=32 * 1024 * 1024,
        ),
    )(targs2d, preds, lv2d)
    return out[0, 0]


def _reference_loss(preds, targs, log_vars):
    """Pure-JAX mirror of e2eTunerLossWrapper.forward for verification."""
    H = preds.shape[0]

    def ce(logits):
        logp = jax.nn.log_softmax(logits.astype(jnp.float32), axis=-1)
        return -jnp.mean(jnp.take_along_axis(logp, targs[:, None], axis=-1))

    total = jnp.float32(0.0)
    for i in range(H - 1):
        total = total + jnp.exp(-log_vars[i]) * ce(preds[i]) + log_vars[1]
    total = total + jnp.exp(-log_vars[-1]) * ce(preds[-1]) + log_vars[-1]
    return total


if __name__ == "__main__":
    H, B, C = 3, 8, 16  # 3 prediction heads (2 mvo + 1 tuner), batch 8, 16 classes

    key = jax.random.PRNGKey(0)
    k_preds, k_targs = jax.random.split(key)
    preds = jax.random.normal(k_preds, (H, B, C), dtype=jnp.float32)
    targs = jax.random.randint(k_targs, (B,), 0, C, dtype=jnp.int32)
    # Module __init__ uses zeros(nOutputs); use deterministic non-trivial values so the
    # precision/log-var combination path is actually exercised.
    log_vars = jnp.linspace(-0.2, 0.3, H).astype(jnp.float32)

    loss = e2e_tuner_loss(preds, targs, log_vars)
    loss = jax.block_until_ready(loss)

    ref = jax.block_until_ready(_reference_loss(preds, targs, log_vars))
    np.testing.assert_allclose(np.asarray(loss), np.asarray(ref), rtol=1e-5, atol=1e-5)

    print("KERNEL_OK")
</pallas_src>

<mosaic_0001>
module attributes {stable_mosaic.version = 11 : i64} {
  func.func @_e2e_tuner_loss_kernel(%arg0: i32, %arg1: memref<8x1xi32, #tpu.memory_space<vmem>>, %arg2: memref<3x8x16xf32, #tpu.memory_space<vmem>>, %arg3: memref<3x1xf32, #tpu.memory_space<vmem>>, %arg4: memref<1x1xf32, #tpu.memory_space<smem>>, %arg5: memref<3x1xf32, #tpu.memory_space<vmem>>) attributes {dimension_semantics = [#tpu.dimension_semantics<arbitrary>], iteration_bounds = array<i64: 1>, scalar_prefetch = 0 : i64, scratch_operands = 1 : i64, tpu.core_type = #tpu.core_type<tc>, window_params = [{transform_indices = @transform_0, window_bounds = array<i64: 8, 1>}, {transform_indices = @transform_1, window_bounds = array<i64: 3, 8, 16>}, {pipeline_mode = #tpu.pipeline_mode<synchronous>, transform_indices = @transform_2, window_bounds = array<i64: 3, 1>}, {transform_indices = @transform_3, window_bounds = array<i64: 1, 1>}]} {
    %c0_i32 = arith.constant 0 : i32
    %0 = arith.cmpi eq, %arg0, %c0_i32 : i32
    %1 = arith.extui %0 : i1 to i32
    %c0_i32_0 = arith.constant 0 : i32
    %2 = arith.cmpi ne, %1, %c0_i32_0 : i32
    scf.if %2 {
      %cst_15 = arith.constant 0.000000e+00 : f32
      %28 = vector.broadcast %cst_15 : f32 to vector<3x1xf32>
      %c0_16 = arith.constant 0 : index
      %c0_17 = arith.constant 0 : index
      %29 = vector.load %arg5[%c0_16, %c0_17] : memref<3x1xf32, #tpu.memory_space<vmem>>, vector<3x1xf32>
      tpu.vector_store %arg5[%c0_16, %c0_17], %28 {strides = array<i32>} : memref<3x1xf32, #tpu.memory_space<vmem>>, vector<3x1xf32>,
    } else {
    }
    %c0 = arith.constant 0 : index
    %c0_1 = arith.constant 0 : index
    %c0_2 = arith.constant 0 : index
    %3 = vector.load %arg2[%c0, %c0_1, %c0_2] : memref<3x8x16xf32, #tpu.memory_space<vmem>>, vector<3x8x16xf32>
    %cst = arith.constant dense<0xFF800000> : vector<3x8xf32>
    %4 = vector.multi_reduction <maximumf>, %3, %cst [2] : vector<3x8x16xf32> to vector<3x8xf32>
    %5 = vector.shape_cast %4 : vector<3x8xf32> to vector<3x8x1xf32>
    %6 = vector.broadcast %5 : vector<3x8x1xf32> to vector<3x8x16xf32>
    %7 = arith.subf %3, %6 : vector<3x8x16xf32>
    %8 = math.exp %7 : vector<3x8x16xf32>
    %cst_3 = arith.constant dense<0.000000e+00> : vector<3x8xf32>
    %9 = vector.multi_reduction <add>, %8, %cst_3 [2] : vector<3x8x16xf32> to vector<3x8xf32>
    %10 = math.log %9 : vector<3x8xf32>
    %11 = tpu.iota {dimensions = array<i32: 2>} : vector<3x8x16xi32>
    %c0_4 = arith.constant 0 : index
    %c0_5 = arith.constant 0 : index
    %12 = vector.load %arg1[%c0_4, %c0_5] : memref<8x1xi32, #tpu.memory_space<vmem>>, vector<8x1xi32>
    %13 = vector.shape_cast %12 : vector<8x1xi32> to vector<1x8x1xi32>
    %14 = vector.broadcast %13 : vector<1x8x1xi32> to vector<3x8x16xi32>
    %15 = arith.cmpi eq, %11, %14 : vector<3x8x16xi32>
    %cst_6 = arith.constant 0.000000e+00 : f32
    %16 = vector.broadcast %cst_6 : f32 to vector<3x8x16xf32>
    %17 = arith.select %15, %7, %16 : vector<3x8x16xi1>, vector<3x8x16xf32>
    %cst_7 = arith.constant dense<0.000000e+00> : vector<3x8xf32>
    %18 = vector.multi_reduction <add>, %17, %cst_7 [2] : vector<3x8x16xf32> to vector<3x8xf32>
    %19 = arith.subf %10, %18 : vector<3x8xf32>
    %c0_8 = arith.constant 0 : index
    %c0_9 = arith.constant 0 : index
    %20 = vector.load %arg5[%c0_8, %c0_9] : memref<3x1xf32, #tpu.memory_space<vmem>>, vector<3x1xf32>
    %cst_10 = arith.constant dense<0.000000e+00> : vector<3xf32>
    %21 = vector.multi_reduction <add>, %19, %cst_10 [1] : vector<3x8xf32> to vector<3xf32>
    %22 = vector.shape_cast %21 : vector<3xf32> to vector<3x1xf32>
    %23 = arith.addf %20, %22 : vector<3x1xf32>
    %c0_11 = arith.constant 0 : index
    %c0_12 = arith.constant 0 : index
    %24 = vector.load %arg5[%c0_11, %c0_12] : memref<3x1xf32, #tpu.memory_space<vmem>>, vector<3x1xf32>
    tpu.vector_store %arg5[%c0_11, %c0_12], %23 {strides = array<i32>} : memref<3x1xf32, #tpu.memory_space<vmem>>, vector<3x1xf32>,
    %c0_i32_13 = arith.constant 0 : i32
    %25 = arith.cmpi eq, %arg0, %c0_i32_13 : i32
    %26 = arith.extui %25 : i1 to i32
    %c0_i32_14 = arith.constant 0 : i32
    %27 = arith.cmpi ne, %26, %c0_i32_14 : i32
    scf.if %27 {
      %c0_15 = arith.constant 0 : index
      %c0_16 = arith.constant 0 : index
      %28 = vector.load %arg3[%c0_15, %c0_16] : memref<3x1xf32, #tpu.memory_space<vmem>>, vector<3x1xf32>
      %c0_17 = arith.constant 0 : index
      %c0_18 = arith.constant 0 : index
      %29 = vector.load %arg5[%c0_17, %c0_18] : memref<3x1xf32, #tpu.memory_space<vmem>>, vector<3x1xf32>
      %cst_19 = arith.constant 1.250000e-01 : f32
      %30 = vector.broadcast %cst_19 : f32 to vector<3x1xf32>
      %31 = arith.mulf %29, %30 : vector<3x1xf32>
      %32 = tpu.iota {dimensions = array<i32: 0>} : vector<3x1xi32>
      %c1_i32 = arith.constant 1 : i32
      %33 = vector.broadcast %c1_i32 : i32 to vector<3x1xi32>
      %34 = arith.cmpi eq, %32, %33 : vector<3x1xi32>
      %cst_20 = arith.constant 2.000000e+00 : f32
      %cst_21 = arith.constant 0.000000e+00 : f32
      %35 = vector.broadcast %cst_20 : f32 to vector<3x1xf32>
      %36 = vector.broadcast %cst_21 : f32 to vector<3x1xf32>
      %37 = arith.select %34, %35, %36 : vector<3x1xi1>, vector<3x1xf32>
      %c2_i32 = arith.constant 2 : i32
      %38 = vector.broadcast %c2_i32 : i32 to vector<3x1xi32>
      %39 = arith.cmpi eq, %32, %38 : vector<3x1xi32>
      %cst_22 = arith.constant 1.000000e+00 : f32
      %cst_23 = arith.constant 0.000000e+00 : f32
      %40 = vector.broadcast %cst_22 : f32 to vector<3x1xf32>
      %41 = vector.broadcast %cst_23 : f32 to vector<3x1xf32>
      %42 = arith.select %39, %40, %41 : vector<3x1xi1>, vector<3x1xf32>
      %43 = arith.addf %37, %42 : vector<3x1xf32>
      %cst_24 = arith.constant 0.000000e+00 : f32
      %44 = vector.broadcast %cst_24 : f32 to vector<3x1xf32>
      %45 = arith.subf %44, %28 : vector<3x1xf32>
      %46 = math.exp %45 : vector<3x1xf32>
      %47 = arith.mulf %46, %31 : vector<3x1xf32>
      %48 = arith.mulf %43, %28 : vector<3x1xf32>
      %49 = arith.addf %47, %48 : vector<3x1xf32>
      %50 = vector.shape_cast %49 : vector<3x1xf32> to vector<1x3x1xf32>
      %cst_25 = arith.constant dense<0.000000e+00> : vector<1xf32>
      %51 = vector.multi_reduction <add>, %50, %cst_25 [1, 2] : vector<1x3x1xf32> to vector<1xf32>
      %52 = vector.shape_cast %51 : vector<1xf32> to vector<1x1x1xf32>
      %53 = vector.extract %52[0, 0, 0] : f32 from vector<1x1x1xf32>
      %c0_26 = arith.constant 0 : index
      %c0_27 = arith.constant 0 : index
      %54 = memref.load %arg4[%c0_26, %c0_27] : memref<1x1xf32, #tpu.memory_space<smem>>
      memref.store %53, %arg4[%c0_26, %c0_27] : memref<1x1xf32, #tpu.memory_space<smem>>
    } else {
    }
    return
  }
  func.func @transform_0(%arg0: i32) -> (i32, i32) {
    %c0_i32 = arith.constant 0 : i32
    %c0_i32_0 = arith.constant 0 : i32
    return %arg0, %c0_i32 : i32, i32
  }
  func.func @transform_1(%arg0: i32) -> (i32, i32, i32) {
    %c0_i32 = arith.constant 0 : i32
    %c0_i32_0 = arith.constant 0 : i32
    %c0_i32_1 = arith.constant 0 : i32
    return %c0_i32, %arg0, %c0_i32_0 : i32, i32, i32
  }
  func.func @transform_2(%arg0: i32) -> (i32, i32) {
    %c0_i32 = arith.constant 0 : i32
    %c0_i32_0 = arith.constant 0 : i32
    %c0_i32_1 = arith.constant 0 : i32
    return %c0_i32, %c0_i32_0 : i32, i32
  }
  func.func @transform_3(%arg0: i32) -> (i32, i32) {
    %c0_i32 = arith.constant 0 : i32
    %c0_i32_0 = arith.constant 0 : i32
    %c0_i32_1 = arith.constant 0 : i32
    return %c0_i32, %c0_i32_0 : i32, i32
  }
}

</mosaic_0001>

<bundles_post_ra>
// kernel: tpu_custom_call.1
= control target key start
LH: loop header
LB: loop body
LE: loop exit
PB: predicated region body
PF: predicated region fallthrough
CT: control target
= control target key end

     0   :  { %8 = vsyncpa [#allocation4], 0  ;;  %s298_s0 = inlined_call_operand.vmem [shape: s32[8,1], index: 0, kind: input, shape index: {}]   ;;  %s299_s1 = inlined_call_operand.hbm [shape: f32[3,8,16], index: 1, kind: input, shape index: {}]   ;;  %s300_s2 = inlined_call_operand.vmem [shape: f32[3,1], index: 2, kind: input, shape index: {}]   ;;  %s301_s3 = inlined_call_operand.hbm [shape: f32[1,1], index: 3, kind: output, shape index: {}]  }
   0x1   :  { %9 = vsyncpa [#allocation5], 0  ;;  %s227_s12 = smov [#allocation3]   ;;  %s191_s16 = scalar_lea.hbm %s299_s1, 384 }
   0x2   :  { %s17_s13 = sshll.u32 %s227_s12, 4  ;;  %p192_p0 = scmp.ne.s32.totalorder %s299_s1, %s191_s16  ;;  %s18_s13 = int_to_ptr.vmem [resolvable:$true] %s17_s13 }
   0x3   :  { %p195_p1 = scmp.lt.u32.totalorder %s191_s16, %s299_s1 }
   0x5   :  { %p197_p2 = pnand %p195_p1, %p192_p0 }
   0x7   :  { %200 = shalt.err (!%p197_p2)
}
   0x8   :  { %s201_s21 = scalar_lea.vmem %s18_s13, 384  ;;  %p206_p4 = scmp.lt.s32.totalorder %s18_s13, %s18_s13 }
   0x9   :  { %p202_p3 = scmp.ne.s32.totalorder %s18_s13, %s201_s21  ;;  %p207_p5 = scmp.lt.s32.totalorder %s201_s21, %s201_s21 }
   0xb   :  { %p208_p6 = por %p207_p5, %p206_p4 }
   0xd   :  { %p209_p7 = pnand %p208_p6, %p202_p3 }
   0xf   :  { %212 = shalt.err (!%p209_p7)
}
  0x10   :  { %s228_s22 = smov 128   ;;  %s229_s23 = smov 8  }
  0x11   :  { %23 = dma.hbm_to_vmem [thread:$0]  %s299_s1, 384, %s18_s13, [#allocation4], %s228_s22, %s228_s22, %s229_s23  }
  0x12   :  { %223 = dma.done.wait [#allocation4], 384  }
  0x13   :  { %224 = vsyncadd [#allocation4], 4294966912  ;;  %v230_v0 = vmov 0   ;;  %vm38_vm0 = vcmask 130048   ;;  %v37_v1 = vld [vmem:[#allocation3 + $0x10] sm:$0xff]  ;;  %v35_v2 = vld [vmem:[#allocation3] sm:$0xff]  ;;  %v72_v8 = vlaneseq }
  0x14   :  { %175 = vset.pattern.permute.xlu1 %v230_v0  ;;  %176 = vset.pattern.permute.xlu0 %v230_v0  ;;  %v36_v3 = vld [vmem:[#allocation3 + $0x8] sm:$0xff]  ;;  %v45_v4 = vsel %vm38_vm0, %v37_v1, -inf  ;;  %v39_v5 = vsel %vm38_vm0, %v35_v2, -inf  ;;  %v74_v7 = vld [vmem:[%s298_s0] sm:$0xff]  ;;  %vm33_vm2 = vcmask 2048   ;;  %v231_v32 = vmov 0.0  }
  0x15   :  { %46 = vmax.xlane.f32.xlu1 %v45_v4  ;;  %40 = vmax.xlane.f32.xlu0 %v39_v5  ;;  %v42_v6 = vsel %vm38_vm0, %v36_v3, -inf  ;;  %v73_v12 = vand.u32 127, %v72_v8  ;;  %34 = vst.msk [vmem:[#allocation2] sm:$0x7] %vm33_vm2, %v231_v32  ;;  %v99_v38 = vshrl.u32 %v72_v8, 7  ;;  %vm110_vm3 = vcmask 1041409  }
  0x16   :  { %vm112_vm4 = vcmask 1042434   ;;  %vm115_vm5 = vcmask 59392   ;;  %v125_v56 = vld [vmem:[%s300_s2] sm:$0x7]  ;;  %s213_s30 = scalar_lea.hbm %s301_s3, 16 }
  0x17   :  { %v100_v45 = vsub.s32 %v73_v12, %v99_v38  ;;  %v135_v57 = vsub.f32 0.0, %v125_v56  ;;  %vm130_vm6 = vcmp.eq.s32.totalorder %v99_v38, 1  ;;  %vm132_vm7 = vcmp.eq.s32.totalorder %v99_v38, 2  ;;  %p214_p8 = scmp.ne.s32.totalorder %s301_s3, %s213_s30  ;;  %p217_p9 = scmp.lt.u32.totalorder %s213_s30, %s301_s3 }
  0x18   :  { %v131_v62 = vsel %vm130_vm6, 2.0, %v231_v32  ;;  %v133_v63 = vsel %vm132_vm7, 1.0, %v231_v32 }
  0x19   :  { %43 = vmax.xlane.f32.xlu0 %v42_v6  ;;  %v136_v58 = vmul.f32 1.442695, %v135_v57  ;;  %v134_v0 = vadd.f32 %v133_v63, %v131_v62  ;;  %p219_p10 = pnand %p217_p9, %p214_p8 }
  0x1b   :  { %v139_v4 = vmul.f32 %v134_v0, %v125_v56 }
  0x1c   :  { %v94_v59 = vld [vmem:[#allocation2] sm:$0x7] }
  0x26   :  { %76 = vperm.xlu1 %175, %v74_v7  }
  0xa2   :  { %v47_v9 = vpop.xlane.xlu1 %46  ;;  %v41_v10 = vpop.xlane.xlu0 %40 }
  0xa3   :  { %v48_v11 = vsub.f32 %v35_v2, %v41_v10  ;;  %v50_v13 = vsub.f32 %v37_v1, %v47_v9 }
  0xa5   :  { %v51_v14 = vmul.f32 1.442695, %v48_v11  ;;  %v55_v18 = vmul.f32 1.442695, %v50_v13 }
  0xa6   :  { %v77_v15 = vpop.permute.xlu1 %76  ;;  %v44_v16 = vpop.xlane.xlu0 %43 }
  0xa7   :  { %vm78_vm1 = vcmp.eq.s32.totalorder %v73_v12, %v77_v15  ;;  %v49_v17 = vsub.f32 %v36_v3, %v44_v16  ;;  %177 = vpow2.f32 %v51_v14 }
  0xa8   :  { %v79_v28 = vsel %vm78_vm1, %v48_v11, 0.0  ;;  %v81_v30 = vsel %vm78_vm1, %v50_v13, 0.0 }
  0xa9   :  { %v53_v19 = vmul.f32 1.442695, %v49_v17  ;;  %v80_v20 = vsel %vm78_vm1, %v49_v17, 0.0  ;;  %v82_v29 = vsel %vm38_vm0, %v79_v28, 0.0  ;;  %v88_v31 = vsel %vm38_vm0, %v81_v30, 0.0 }
  0xaa   :  { %v85_v21 = vsel %vm38_vm0, %v80_v20, 0.0 }
  0xab   :  { %179 = vpow2.f32 %v53_v19  ;;  %86 = vadd.xlane.f32.xlu1 %v85_v21 }
  0xac   :  { %181 = vpow2.f32 %v55_v18 }
  0xb1   :  { %v178_v22 = vpop.eup %177 }
  0xb2   :  { %v57_v23 = vsel %vm38_vm0, %v178_v22, 0.0 }
  0xb3   :  { %58 = vadd.xlane.f32.xlu0 %v57_v23 }
  0xb5   :  { %v180_v24 = vpop.eup %179 }
  0xb6   :  { %v182_v25 = vpop.eup %181  ;;  %v60_v26 = vsel %vm38_vm0, %v180_v24, 0.0 }
  0xb7   :  { %61 = vadd.xlane.f32.xlu0 %v60_v26  ;;  %v63_v27 = vsel %vm38_vm0, %v182_v25, 0.0 }
  0xbb   :  { %64 = vadd.xlane.f32.xlu0 %v63_v27 }
  0xbf   :  { %83 = vadd.xlane.f32.xlu0 %v82_v29 }
  0xc3   :  { %89 = vadd.xlane.f32.xlu0 %v88_v31 }
 0x138   :  { %v87_v42 = vpop.xlane.xlu1 %86 }
 0x140   :  { %v59_v33 = vpop.xlane.xlu0 %58 }
 0x141   :  { %183 = vlog2.f32 %v59_v33 }
 0x144   :  { %v62_v34 = vpop.xlane.xlu0 %61 }
 0x145   :  { %185 = vlog2.f32 %v62_v34 }
 0x148   :  { %v65_v35 = vpop.xlane.xlu0 %64 }
 0x149   :  { %187 = vlog2.f32 %v65_v35 }
 0x14a   :  { %189 = vpow2.f32 %v136_v58 }
 0x14b   :  { %v184_v36 = vpop.eup %183 }
 0x14c   :  { %v67_v39 = vmul.f32 0.6931472, %v184_v36  ;;  %v84_v40 = vpop.xlane.xlu0 %83 }
 0x14e   :  { %v91_v46 = vsub.f32 %v67_v39, %v84_v40 }
 0x14f   :  { %v186_v37 = vpop.eup %185 }
 0x150   :  { %v69_v41 = vmul.f32 0.6931472, %v186_v37  ;;  %v90_v49 = vpop.xlane.xlu0 %89  ;;  %v101_v51 = vrot.slane %v91_v46, %v100_v45 }
 0x152   :  { %v92_v43 = vsub.f32 %v69_v41, %v87_v42 }
 0x153   :  { %v188_v44 = vpop.eup %187 }
 0x154   :  { %v71_v47 = vmul.f32 0.6931472, %v188_v44  ;;  %v105_v48 = vrot.slane %v92_v43, %v100_v45  ;;  %v190_v1 = vpop.eup %189 }
 0x156   :  { %v93_v50 = vsub.f32 %v71_v47, %v90_v49  ;;  %v111_v53 = vsel %vm110_vm3, %v105_v48, %v101_v51 }
 0x158   :  { %v109_v52 = vrot.slane %v93_v50, %v100_v45 }
 0x15a   :  { %v113_v54 = vsel %vm112_vm4, %v109_v52, %v111_v53 }
 0x15b   :  { %v116_v55 = vsel %vm115_vm5, %v113_v54, 0.0 }
 0x15c   :  { %117 = vadd.xlane.f32.xlu0 %v116_v55 }
 0x1e9   :  { %v118_v60 = vpop.xlane.xlu0 %117 }
 0x1ea   :  { %v119_v61 = vadd.f32 %v118_v60, %v94_v59 }
 0x1ec   :  { %121 = vst.msk [vmem:[#allocation2] sm:$0x7] %vm33_vm2, %v119_v61 }
 0x1f3   :  { %v126_v2 = vld [vmem:[#allocation2] sm:$0x7] }
 0x1f4   :  { %v127_v3 = vmul.f32 0.125, %v126_v2 }
 0x1f6   :  { %v138_v5 = vmul.f32 %v190_v1, %v127_v3 }
 0x1f8   :  { %v140_v6 = vadd.f32 %v139_v4, %v138_v5 }
 0x1fa   :  { %v141_v7 = vsel %vm33_vm2, %v140_v6, 0.0 }
 0x1fb   :  { %142 = vadd.xlane.f32.xlu0 %v141_v7 }
 0x288   :  { %v143_v8 = vpop.xlane.xlu0 %142 }
 0x289   :  { %v144_v9 = vrot.slane %v143_v8, 4 }
 0x28b   :  { %v145_v10 = vadd.f32 %v144_v9, %v143_v8 }
 0x28d   :  { %v146_v11 = vrot.slane %v145_v10, 2 }
 0x28f   :  { %v147_v12 = vadd.f32 %v146_v11, %v145_v10 }
 0x291   :  { %v148_v13 = vrot.slane %v147_v12, 1 }
 0x293   :  { %v149_v14 = vadd.f32 %v148_v13, %v147_v12 }
 0x295   :  { %167 = vpush %v149_v14 }
 0x2c6   :  { %s168_s2 = spop %167 }
 0x2c7   :  { %152 = sst [smem:[#allocation6]] %s168_s2 }
 0x2c8   :  { %222 = shalt.err (!%p219_p10)
}
 0x2c9   :  { %s232_s8 = smov [#allocation6]  }
 0x2ca   :  { %160 = dma.smem_to_hbm %s232_s8, 16, %s301_s3, [#allocation5]  }
 0x2cb   :  { %225 = dma.done.wait [#allocation5], 16  }
 0x2cc   :  { %226 = vsyncadd [#allocation5], 4294967280 }
 0x2cd   :  { %164 = sfence }
 0x2ce   :  { %165 = vsyncpa [#allocation4], 1 }
 0x2cf   :  { %166 = vsyncpa [#allocation5], 1 }

</bundles_post_ra>
